<compile_context>
chip_gen: v5e
topology: v5e:2x2
jax: 0.10.0
libtpu: 0.0.40
codegen_flags: <defaults>
</compile_context>

<pallas_src>
import functools

import jax
import jax.numpy as jnp
from jax.experimental import pallas as pl
from jax.experimental.pallas import tpu as pltpu


def channel_attention_kernel(x_ref, w1s_ref, w2t_ref, shift_ref, o_ref,
                             sum_acc, max_acc, *, hw_total, needs_mask):
    # x_ref    : (tB, C, tHW)  input tile (any float dtype)
    # w1s_ref  : (C, Cr)       first 1x1 conv weight, transposed, BN-scale folded in
    # w2t_ref  : (Cr, C)       second 1x1 conv weight, transposed
    # shift_ref: (1, Cr)       folded BatchNorm shift
    # o_ref    : (tB, C)       channel attention weights (written on last HW tile)
    # sum_acc  : (tB, C) f32   running sum accumulator
    # max_acc  : (tB, C) f32   running max accumulator
    k = pl.program_id(1)
    n_k = pl.num_programs(1)

    @pl.when(k == 0)
    def _init():
        sum_acc[...] = jnp.zeros_like(sum_acc)
        max_acc[...] = jnp.full_like(max_acc, -jnp.inf)

    x = x_ref[...].astype(jnp.float32)                     # (tB, C, tHW)
    t_hw = x.shape[-1]

    if needs_mask:
        # Global spatial positions for this tile; mask the ragged tail.
        pos = k * t_hw + jax.lax.broadcasted_iota(jnp.int32, x.shape, 2)
        valid = pos < hw_total
        x_sum = jnp.where(valid, x, 0.0)
        x_max = jnp.where(valid, x, -jnp.inf)
    else:
        x_sum = x
        x_max = x

    sum_acc[...] += jnp.sum(x_sum, axis=-1)                # (tB, C)
    max_acc[...] = jnp.maximum(max_acc[...], jnp.max(x_max, axis=-1))

    @pl.when(k == n_k - 1)
    def _finalize():
        avg_pool = sum_acc[...] * (1.0 / hw_total)         # (tB, C)
        max_pool = max_acc[...]                            # (tB, C)
        tb = avg_pool.shape[0]

        # Run both pooled branches through the FC stack in one pass.
        pooled = jnp.concatenate([avg_pool, max_pool], axis=0)     # (2*tB, C)
        # 1x1 conv C -> Cr with BN scale folded into the weight, + shift, ReLU.
        h = jnp.dot(pooled, w1s_ref[...], preferred_element_type=jnp.float32)
        h = jnp.maximum(h + shift_ref[...], 0.0)                   # (2*tB, Cr)
        # 1x1 conv Cr -> C.
        y2 = jnp.dot(h, w2t_ref[...], preferred_element_type=jnp.float32)
        y = y2[:tb, :] + y2[tb:, :]                                # (tB, C)
        o_ref[...] = jax.nn.sigmoid(y).astype(o_ref.dtype)


def _pick_tiles(B, C, HW, itemsize):
    """Pick (tB, tHW) so one input block is <= ~8 MiB and lane-aligned."""
    tB = 1
    for cand in (8, 4, 2, 1):
        if B % cand == 0:
            tB = cand
            break
    block_budget_bytes = 8 * 1024 * 1024
    if HW <= 128:
        t_hw = HW                                  # full dim -- always legal
    else:
        max_thw = max(128, block_budget_bytes // max(1, tB * C * itemsize))
        t_hw = min(HW, max_thw)
        t_hw = max(128, (t_hw // 128) * 128)       # multiple of 128 (lane axis)
    return tB, t_hw


def channel_attention(x, w1, w2, bn_gamma, bn_beta, bn_mean, bn_var, eps=1e-5):
    """x: (B, C, H, W) float. Returns attention weights (B, C, 1, 1) float32."""
    B, C, H, W = x.shape
    Cr = w1.shape[0]
    HW = H * W

    x_flat = x.reshape(B, C, HW)

    # Fold BatchNorm running stats (inference semantics):
    #   bn(h) = h * scale + shift,  scale = gamma/sqrt(var+eps),
    #   shift = beta - mean*scale.  Fold `scale` into the first conv weight.
    scale = bn_gamma / jnp.sqrt(bn_var + eps)                       # (Cr,)
    shift = (bn_beta - bn_mean * scale).reshape(1, Cr).astype(jnp.float32)
    w1s = (w1.reshape(Cr, C).T * scale[None, :]).astype(jnp.float32)  # (C, Cr)
    w2t = w2.reshape(C, Cr).T.astype(jnp.float32)                     # (Cr, C)

    tB, t_hw = _pick_tiles(B, C, HW, x_flat.dtype.itemsize)
    n_b = B // tB
    n_k = pl.cdiv(HW, t_hw)
    needs_mask = (HW % t_hw) != 0

    kernel = functools.partial(
        channel_attention_kernel, hw_total=HW, needs_mask=needs_mask)

    cost = pl.CostEstimate(
        flops=int(2 * B * C * HW + 8 * B * C * Cr),
        transcendentals=int(B * C),
        bytes_accessed=int(B * C * HW * x_flat.dtype.itemsize
                           + B * C * 4 + (2 * C * Cr + Cr) * 4),
    )

    out = pl.pallas_call(
        kernel,
        out_shape=jax.ShapeDtypeStruct((B, C), jnp.float32),
        grid_spec=pltpu.PrefetchScalarGridSpec(
            num_scalar_prefetch=0,
            grid=(n_b, n_k),
            in_specs=[
                pl.BlockSpec((tB, C, t_hw), lambda b, k: (b, 0, k)),   # x stream
                pl.BlockSpec((C, Cr), lambda b, k: (0, 0)),            # w1 (scaled)
                pl.BlockSpec((Cr, C), lambda b, k: (0, 0)),            # w2
                pl.BlockSpec((1, Cr), lambda b, k: (0, 0)),            # BN shift
            ],
            out_specs=pl.BlockSpec((tB, C), lambda b, k: (b, 0)),
            scratch_shapes=[
                pltpu.VMEM((tB, C), jnp.float32),   # running sum
                pltpu.VMEM((tB, C), jnp.float32),   # running max
            ],
        ),
        compiler_params=pltpu.CompilerParams(
            dimension_semantics=("parallel", "arbitrary"),
            vmem_limit_bytes=48 * 1024 * 1024,
        ),
        cost_estimate=cost,
    )(x_flat, w1s, w2t, shift)

    return out.reshape(B, C, 1, 1)


def reference(x, w1, w2, bn_gamma, bn_beta, bn_mean, bn_var, eps=1e-5):
    """Pure-JAX reference mirroring the PyTorch forward (eval-mode BN)."""
    B, C, H, W = x.shape
    Cr = w1.shape[0]
    w1m = w1.reshape(Cr, C)
    w2m = w2.reshape(C, Cr)

    def fc(pooled):  # pooled: (B, C)
        h = pooled @ w1m.T
        h = (h - bn_mean) / jnp.sqrt(bn_var + eps) * bn_gamma + bn_beta
        h = jnp.maximum(h, 0.0)
        return h @ w2m.T

    avg = jnp.mean(x.astype(jnp.float32), axis=(2, 3))
    mx = jnp.max(x.astype(jnp.float32), axis=(2, 3))
    return jax.nn.sigmoid(fc(avg) + fc(mx)).reshape(B, C, 1, 1)


if __name__ == "__main__":
    # Shapes consistent with the module: channel=64, reduction=16 -> hidden=4.
    B, C, H, W = 2, 64, 16, 16
    reduction = 16
    Cr = C // reduction

    key = jax.random.PRNGKey(0)
    kx, k1, k2, kg, kb, km, kv = jax.random.split(key, 7)

    x = jax.random.normal(kx, (B, C, H, W), dtype=jnp.float32)
    # Conv2d weights: (out_ch, in_ch, 1, 1), no bias.
    w1 = jax.random.normal(k1, (Cr, C, 1, 1), dtype=jnp.float32) * 0.1
    w2 = jax.random.normal(k2, (C, Cr, 1, 1), dtype=jnp.float32) * 0.1
    # BatchNorm2d(Cr) parameters + running stats (deterministic, non-trivial).
    bn_gamma = 1.0 + 0.1 * jax.random.normal(kg, (Cr,), dtype=jnp.float32)
    bn_beta = 0.1 * jax.random.normal(kb, (Cr,), dtype=jnp.float32)
    bn_mean = 0.05 * jax.random.normal(km, (Cr,), dtype=jnp.float32)
    bn_var = jnp.abs(1.0 + 0.1 * jax.random.normal(kv, (Cr,), dtype=jnp.float32))

    y = channel_attention(x, w1, w2, bn_gamma, bn_beta, bn_mean, bn_var)
    y = jax.block_until_ready(y)

    y_ref = reference(x, w1, w2, bn_gamma, bn_beta, bn_mean, bn_var)
    assert y.shape == (B, C, 1, 1)
    assert jnp.allclose(y, y_ref, atol=1e-5, rtol=1e-5), "mismatch vs reference"

    print("KERNEL_OK")
</pallas_src>

<mosaic_0001>
module attributes {stable_mosaic.version = 11 : i64} {
  func.func @channel_attention_kernel(%arg0: i32, %arg1: i32, %arg2: memref<2x64x256xf32, #tpu.memory_space<vmem>>, %arg3: memref<64x4xf32, #tpu.memory_space<vmem>>, %arg4: memref<4x64xf32, #tpu.memory_space<vmem>>, %arg5: memref<1x4xf32, #tpu.memory_space<vmem>>, %arg6: memref<2x64xf32, #tpu.memory_space<vmem>>, %arg7: memref<2x64xf32, #tpu.memory_space<vmem>>, %arg8: memref<2x64xf32, #tpu.memory_space<vmem>>) attributes {dimension_semantics = [#tpu.dimension_semantics<parallel>, #tpu.dimension_semantics<arbitrary>], iteration_bounds = array<i64: 1, 1>, scalar_prefetch = 0 : i64, scratch_operands = 2 : i64, tpu.core_type = #tpu.core_type<tc>, window_params = [{transform_indices = @transform_0, window_bounds = array<i64: 2, 64, 256>}, {pipeline_mode = #tpu.pipeline_mode<synchronous>, transform_indices = @transform_1, window_bounds = array<i64: 64, 4>}, {pipeline_mode = #tpu.pipeline_mode<synchronous>, transform_indices = @transform_2, window_bounds = array<i64: 4, 64>}, {pipeline_mode = #tpu.pipeline_mode<synchronous>, transform_indices = @transform_3, window_bounds = array<i64: 1, 4>}, {transform_indices = @transform_4, window_bounds = array<i64: 2, 64>}]} {
    %c0_i32 = arith.constant 0 : i32
    %0 = arith.cmpi eq, %arg1, %c0_i32 : i32
    %1 = arith.extui %0 : i1 to i32
    %c0_i32_0 = arith.constant 0 : i32
    %2 = arith.cmpi ne, %1, %c0_i32_0 : i32
    scf.if %2 {
      %cst_14 = arith.constant 0.000000e+00 : f32
      %15 = vector.broadcast %cst_14 : f32 to vector<2x64xf32>
      %c0_15 = arith.constant 0 : index
      %c0_16 = arith.constant 0 : index
      %16 = vector.load %arg7[%c0_15, %c0_16] : memref<2x64xf32, #tpu.memory_space<vmem>>, vector<2x64xf32>
      tpu.vector_store %arg7[%c0_15, %c0_16], %15 {strides = array<i32>} : memref<2x64xf32, #tpu.memory_space<vmem>>, vector<2x64xf32>,
      %cst_17 = arith.constant 0xFF800000 : f32
      %17 = vector.broadcast %cst_17 : f32 to vector<2x64xf32>
      %c0_18 = arith.constant 0 : index
      %c0_19 = arith.constant 0 : index
      %18 = vector.load %arg8[%c0_18, %c0_19] : memref<2x64xf32, #tpu.memory_space<vmem>>, vector<2x64xf32>
      tpu.vector_store %arg8[%c0_18, %c0_19], %17 {strides = array<i32>} : memref<2x64xf32, #tpu.memory_space<vmem>>, vector<2x64xf32>,
    } else {
    }
    %c0 = arith.constant 0 : index
    %c0_1 = arith.constant 0 : index
    %c0_2 = arith.constant 0 : index
    %3 = vector.load %arg2[%c0, %c0_1, %c0_2] : memref<2x64x256xf32, #tpu.memory_space<vmem>>, vector<2x64x256xf32>
    %c0_3 = arith.constant 0 : index
    %c0_4 = arith.constant 0 : index
    %4 = vector.load %arg7[%c0_3, %c0_4] : memref<2x64xf32, #tpu.memory_space<vmem>>, vector<2x64xf32>
    %cst = arith.constant dense<0.000000e+00> : vector<2x64xf32>
    %5 = vector.multi_reduction <add>, %3, %cst [2] : vector<2x64x256xf32> to vector<2x64xf32>
    %6 = arith.addf %4, %5 : vector<2x64xf32>
    %c0_5 = arith.constant 0 : index
    %c0_6 = arith.constant 0 : index
    %7 = vector.load %arg7[%c0_5, %c0_6] : memref<2x64xf32, #tpu.memory_space<vmem>>, vector<2x64xf32>
    tpu.vector_store %arg7[%c0_5, %c0_6], %6 {strides = array<i32>} : memref<2x64xf32, #tpu.memory_space<vmem>>, vector<2x64xf32>,
    %c0_7 = arith.constant 0 : index
    %c0_8 = arith.constant 0 : index
    %8 = vector.load %arg8[%c0_7, %c0_8] : memref<2x64xf32, #tpu.memory_space<vmem>>, vector<2x64xf32>
    %cst_9 = arith.constant dense<0xFF800000> : vector<2x64xf32>
    %9 = vector.multi_reduction <maximumf>, %3, %cst_9 [2] : vector<2x64x256xf32> to vector<2x64xf32>
    %10 = arith.maximumf %8, %9 : vector<2x64xf32>
    %c0_10 = arith.constant 0 : index
    %c0_11 = arith.constant 0 : index
    %11 = vector.load %arg8[%c0_10, %c0_11] : memref<2x64xf32, #tpu.memory_space<vmem>>, vector<2x64xf32>
    tpu.vector_store %arg8[%c0_10, %c0_11], %10 {strides = array<i32>} : memref<2x64xf32, #tpu.memory_space<vmem>>, vector<2x64xf32>,
    %c0_i32_12 = arith.constant 0 : i32
    %12 = arith.cmpi eq, %arg1, %c0_i32_12 : i32
    %13 = arith.extui %12 : i1 to i32
    %c0_i32_13 = arith.constant 0 : i32
    %14 = arith.cmpi ne, %13, %c0_i32_13 : i32
    scf.if %14 {
      %c0_14 = arith.constant 0 : index
      %c0_15 = arith.constant 0 : index
      %15 = vector.load %arg7[%c0_14, %c0_15] : memref<2x64xf32, #tpu.memory_space<vmem>>, vector<2x64xf32>
      %cst_16 = arith.constant 3.906250e-03 : f32
      %16 = vector.broadcast %cst_16 : f32 to vector<2x64xf32>
      %17 = arith.mulf %15, %16 : vector<2x64xf32>
      %c0_17 = arith.constant 0 : index
      %c0_18 = arith.constant 0 : index
      %18 = vector.load %arg8[%c0_17, %c0_18] : memref<2x64xf32, #tpu.memory_space<vmem>>, vector<2x64xf32>
      %19 = tpu.concatenate %17, %18 in 0 : vector<2x64xf32>, vector<2x64xf32> -> vector<4x64xf32>
      %c0_19 = arith.constant 0 : index
      %c0_20 = arith.constant 0 : index
      %20 = vector.load %arg3[%c0_19, %c0_20] : memref<64x4xf32, #tpu.memory_space<vmem>>, vector<64x4xf32>
      %cst_21 = arith.constant dense<0.000000e+00> : vector<4x4xf32>
      %21 = tpu.matmul %19, %20, %cst_21 {dimension_numbers = #tpu.dot_dimension_numbers<[1], [0], [0], [1], [0, 0, 1, 1], [], []>} : vector<4x64xf32>, vector<64x4xf32>, vector<4x4xf32> -> vector<4x4xf32>
      %c0_22 = arith.constant 0 : index
      %c0_23 = arith.constant 0 : index
      %22 = vector.load %arg5[%c0_22, %c0_23] : memref<1x4xf32, #tpu.memory_space<vmem>>, vector<1x4xf32>
      %23 = vector.broadcast %22 : vector<1x4xf32> to vector<4x4xf32>
      %24 = arith.addf %21, %23 : vector<4x4xf32>
      %cst_24 = arith.constant 0.000000e+00 : f32
      %25 = vector.broadcast %cst_24 : f32 to vector<4x4xf32>
      %26 = arith.maximumf %24, %25 : vector<4x4xf32>
      %c0_25 = arith.constant 0 : index
      %c0_26 = arith.constant 0 : index
      %27 = vector.load %arg4[%c0_25, %c0_26] : memref<4x64xf32, #tpu.memory_space<vmem>>, vector<4x64xf32>
      %cst_27 = arith.constant dense<0.000000e+00> : vector<4x64xf32>
      %28 = tpu.matmul %26, %27, %cst_27 {dimension_numbers = #tpu.dot_dimension_numbers<[1], [0], [0], [1], [0, 0, 1, 1], [], []>} : vector<4x4xf32>, vector<4x64xf32>, vector<4x64xf32> -> vector<4x64xf32>
      %29 = vector.extract_strided_slice %28 {offsets = [0, 0], sizes = [2, 64], strides = [1, 1]} : vector<4x64xf32> to vector<2x64xf32>
      %30 = vector.extract_strided_slice %28 {offsets = [2, 0], sizes = [2, 64], strides = [1, 1]} : vector<4x64xf32> to vector<2x64xf32>
      %31 = arith.addf %29, %30 : vector<2x64xf32>
      %32 = arith.negf %31 : vector<2x64xf32>
      %33 = math.exp %32 : vector<2x64xf32>
      %cst_28 = arith.constant 1.000000e+00 : f32
      %34 = vector.broadcast %cst_28 : f32 to vector<2x64xf32>
      %35 = arith.addf %34, %33 : vector<2x64xf32>
      %36 = arith.divf %34, %35 : vector<2x64xf32>
      %c0_29 = arith.constant 0 : index
      %c0_30 = arith.constant 0 : index
      %37 = vector.load %arg6[%c0_29, %c0_30] : memref<2x64xf32, #tpu.memory_space<vmem>>, vector<2x64xf32>
      tpu.vector_store %arg6[%c0_29, %c0_30], %36 {strides = array<i32>} : memref<2x64xf32, #tpu.memory_space<vmem>>, vector<2x64xf32>,
    } else {
    }
    return
  }
  func.func @transform_0(%arg0: i32, %arg1: i32) -> (i32, i32, i32) {
    %c0_i32 = arith.constant 0 : i32
    %c0_i32_0 = arith.constant 0 : i32
    return %arg0, %c0_i32, %arg1 : i32, i32, i32
  }
  func.func @transform_1(%arg0: i32, %arg1: i32) -> (i32, i32) {
    %c0_i32 = arith.constant 0 : i32
    %c0_i32_0 = arith.constant 0 : i32
    %c0_i32_1 = arith.constant 0 : i32
    return %c0_i32, %c0_i32_0 : i32, i32
  }
  func.func @transform_2(%arg0: i32, %arg1: i32) -> (i32, i32) {
    %c0_i32 = arith.constant 0 : i32
    %c0_i32_0 = arith.constant 0 : i32
    %c0_i32_1 = arith.constant 0 : i32
    return %c0_i32, %c0_i32_0 : i32, i32
  }
  func.func @transform_3(%arg0: i32, %arg1: i32) -> (i32, i32) {
    %c0_i32 = arith.constant 0 : i32
    %c0_i32_0 = arith.constant 0 : i32
    %c0_i32_1 = arith.constant 0 : i32
    return %c0_i32, %c0_i32_0 : i32, i32
  }
  func.func @transform_4(%arg0: i32, %arg1: i32) -> (i32, i32) {
    %c0_i32 = arith.constant 0 : i32
    %c0_i32_0 = arith.constant 0 : i32
    return %arg0, %c0_i32 : i32, i32
  }
}

</mosaic_0001>

<bundles_post_ra>
// kernel: tpu_custom_call.1
= control target key start
LH: loop header
LB: loop body
LE: loop exit
PB: predicated region body
PF: predicated region fallthrough
CT: control target
= control target key end

     0   :  { %9 = vsyncpa [#allocation5], 0  ;;  %s694_s0 = inlined_call_operand.hbm [shape: f32[2,64,256], index: 0, kind: input, shape index: {}]   ;;  %s695_s1 = inlined_call_operand.vmem [shape: f32[64,4], index: 1, kind: input, shape index: {}]   ;;  %s696_s2 = inlined_call_operand.vmem [shape: f32[4,64], index: 2, kind: input, shape index: {}]   ;;  %s697_s3 = inlined_call_operand.vmem [shape: f32[1,4], index: 3, kind: input, shape index: {}]   ;;  %s698_s4 = inlined_call_operand.hbm [shape: f32[2,64], index: 4, kind: output, shape index: {}]  }
   0x1   :  { %10 = vsyncpa [#allocation6], 0  ;;  %s15_s17 = sshll.u32 %s694_s0, 4  ;;  %s474_s18 = smov [#allocation4]   ;;  %s16_s17 = int_to_ptr.hbm [resolvable:$true] %s15_s17 }
   0x2   :  { %s17_s19 = sshll.u32 %s474_s18, 4  ;;  %s475_s20 = smov 256   ;;  %s18_s19 = int_to_ptr.vmem [resolvable:$true] %s17_s19 }
   0x3   :  { %s476_s21 = smov 16  }
   0x4   :  { %23 = dma.hbm_to_vmem [thread:$0]  %s16_s17, 4096, %s18_s19, [#allocation5], %s475_s20, %s475_s20, %s476_s21  }
   0x5   :  { %470 = dma.done.wait [#allocation5], 4096  }
   0x6   :  { %471 = vsyncadd [#allocation5], 4294963200  ;;  %v57_v0 = vld [vmem:[#allocation4 + $0x80] sm:$0xff]  ;;  %v58_v1 = vld [vmem:[#allocation4 + $0x88] sm:$0xff]  ;;  %vm143_vm0 = vcmask 130112   ;;  %vm38_vm1 = vcmask 517120  }
   0x7   :  { %v41_v2 = vld [vmem:[#allocation4] sm:$0xff]  ;;  %v98_v3 = vadd.f32 %v58_v1, %v57_v0  ;;  %v42_v4 = vld [vmem:[#allocation4 + $0x8] sm:$0xff]  ;;  %v59_v7 = vld [vmem:[#allocation4 + $0x90] sm:$0xff]  ;;  %v215_v18 = vmax.f32 %v57_v0, %v58_v1  ;;  %v138_v0 = vlaneseq  ;;  %vm147_vm2 = vcmask 195712   ;;  %s397_s16 = sshll.u32 %s698_s4, 4  ;;  %s398_s16 = int_to_ptr.hbm [resolvable:$true] %s397_s16 }
   0x8   :  { %v191_v5 = vmax.f32 %v41_v2, %v42_v4  ;;  %v74_v6 = vadd.f32 %v42_v4, %v41_v2  ;;  %v60_v8 = vld [vmem:[#allocation4 + $0x98] sm:$0xff]  ;;  %v43_v9 = vld [vmem:[#allocation4 + $0x10] sm:$0xff]  ;;  %v45_v14 = vld [vmem:[#allocation4 + $0x20] sm:$0xff]  ;;  %vm151_vm3 = vcmask 261312   ;;  %vm155_vm4 = vcmask 326912  }
   0x9   :  { %99 = vadd.xlane.f32.xlu1 %v98_v3  ;;  %v44_v10 = vld [vmem:[#allocation4 + $0x18] sm:$0xff]  ;;  %v101_v11 = vadd.f32 %v60_v8, %v59_v7  ;;  %v46_v15 = vld [vmem:[#allocation4 + $0x28] sm:$0xff]  ;;  %v218_v16 = vmax.f32 %v59_v7, %v60_v8  ;;  %v61_v19 = vld [vmem:[#allocation4 + $0xa0] sm:$0xff]  ;;  %v512_v4 = vand.u32 127, %v138_v0  ;;  %vm159_vm5 = vcmask 392512  }
   0xa   :  { %192 = vmax.xlane.f32.xlu2 %v191_v5  ;;  %75 = vadd.xlane.f32.xlu0 %v74_v6  ;;  %v194_v12 = vmax.f32 %v43_v9, %v44_v10  ;;  %v77_v13 = vadd.f32 %v44_v10, %v43_v9  ;;  %v80_v17 = vadd.f32 %v46_v15, %v45_v14  ;;  %v62_v20 = vld [vmem:[#allocation4 + $0xa8] sm:$0xff]  ;;  %v63_v24 = vld [vmem:[#allocation4 + $0xb0] sm:$0xff]  ;;  %v64_v25 = vld [vmem:[#allocation4 + $0xb8] sm:$0xff]  ;;  %vm163_vm6 = vcmask 458112  }
   0xb   :  { %v197_v21 = vmax.f32 %v45_v14, %v46_v15  ;;  %v221_v22 = vmax.f32 %v61_v19, %v62_v20  ;;  %v104_v23 = vadd.f32 %v62_v20, %v61_v19  ;;  %v47_v26 = vld [vmem:[#allocation4 + $0x30] sm:$0xff]  ;;  %v48_v27 = vld [vmem:[#allocation4 + $0x38] sm:$0xff]  ;;  %v107_v28 = vadd.f32 %v64_v25, %v63_v24  ;;  %v49_v31 = vld [vmem:[#allocation4 + $0x40] sm:$0xff] }
   0xc   :  { %v200_v29 = vmax.f32 %v47_v26, %v48_v27  ;;  %v83_v30 = vadd.f32 %v48_v27, %v47_v26  ;;  %v50_v32 = vld [vmem:[#allocation4 + $0x48] sm:$0xff]  ;;  %v65_v33 = vld [vmem:[#allocation4 + $0xc0] sm:$0xff]  ;;  %v224_v37 = vmax.f32 %v63_v24, %v64_v25  ;;  %v51_v38 = vld [vmem:[#allocation4 + $0x50] sm:$0xff]  ;;  %v515_v5 = vadd.s32 4294967288, %v512_v4 }
   0xd   :  { %v66_v34 = vld [vmem:[#allocation4 + $0xc8] sm:$0xff]  ;;  %v86_v35 = vadd.f32 %v50_v32, %v49_v31  ;;  %v52_v39 = vld [vmem:[#allocation4 + $0x58] sm:$0xff]  ;;  %v203_v42 = vmax.f32 %v49_v31, %v50_v32  ;;  %v67_v43 = vld [vmem:[#allocation4 + $0xd0] sm:$0xff]  ;;  %v478_v25 = vmov -inf   ;;  %vm167_vm7 = vcmask 523712  }
   0xe   :  { %v110_v36 = vadd.f32 %v66_v34, %v65_v33  ;;  %v227_v40 = vmax.f32 %v65_v33, %v66_v34  ;;  %v89_v41 = vadd.f32 %v52_v39, %v51_v38  ;;  %v68_v44 = vld [vmem:[#allocation4 + $0xd8] sm:$0xff]  ;;  %v206_v45 = vmax.f32 %v51_v38, %v52_v39  ;;  %v69_v48 = vld [vmem:[#allocation4 + $0xe0] sm:$0xff]  ;;  %v70_v49 = vld [vmem:[#allocation4 + $0xe8] sm:$0xff]  ;;  %40 = vst.msk [vmem:[#allocation3] sm:$0x3] %vm38_vm1, %v478_v25 }
   0xf   :  { %v230_v46 = vmax.f32 %v67_v43, %v68_v44  ;;  %v113_v47 = vadd.f32 %v68_v44, %v67_v43  ;;  %v53_v50 = vld [vmem:[#allocation4 + $0x60] sm:$0xff]  ;;  %v54_v51 = vld [vmem:[#allocation4 + $0x68] sm:$0xff]  ;;  %v116_v52 = vadd.f32 %v70_v49, %v69_v48  ;;  %v55_v55 = vld [vmem:[#allocation4 + $0x70] sm:$0xff]  ;;  %v233_v61 = vmax.f32 %v69_v48, %v70_v49 }
  0x10   :  { %v209_v53 = vmax.f32 %v53_v50, %v54_v51  ;;  %v92_v54 = vadd.f32 %v54_v51, %v53_v50  ;;  %v56_v56 = vld [vmem:[#allocation4 + $0x78] sm:$0xff]  ;;  %v71_v57 = vld [vmem:[#allocation4 + $0xf0] sm:$0xff]  ;;  %v305_v31 = vld [vmem:[%s695_s1 + $0x28] sm:$0xff]  ;;  %v584_v39 = vadd.s32 4294967280, %v512_v4  ;;  %v597_v44 = vadd.s32 4294967264, %v512_v4 }
  0x11   :  { %102 = vadd.xlane.f32.xlu1 %v101_v11  ;;  %v72_v58 = vld [vmem:[#allocation4 + $0xf8] sm:$0xff]  ;;  %v95_v59 = vadd.f32 %v56_v56, %v55_v55  ;;  %v212_v63 = vmax.f32 %v55_v55, %v56_v56  ;;  %v301_v38 = vld [vmem:[%s695_s1 + $0x8] sm:$0xff]  ;;  %vm184_vm8 = vcmask 1041409   ;;  %vm298_vm9 = vcmask 1041408  }
  0x12   :  { %195 = vmax.xlane.f32.xlu2 %v194_v12  ;;  %78 = vadd.xlane.f32.xlu0 %v77_v13  ;;  %v119_v60 = vadd.f32 %v72_v58, %v71_v57  ;;  %v236_v62 = vmax.f32 %v71_v57, %v72_v58  ;;  %v304_v33 = vld [vmem:[%s695_s1 + $0x20] sm:$0xff]  ;;  %vm312_vm10 = vcmask 523264   ;;  %vm342_vm11 = vcmask 1043456  }
  0x13   :  { %vm338_vm12 = vcmask 31744  }
  0x19   :  { %219 = vmax.xlane.f32.xlu1 %v218_v16 }
  0x1a   :  { %81 = vadd.xlane.f32.xlu2 %v80_v17  ;;  %216 = vmax.xlane.f32.xlu0 %v215_v18 }
  0x21   :  { %198 = vmax.xlane.f32.xlu1 %v197_v21  ;;  %v477_v21 = vmov 0.0  }
  0x22   :  { %222 = vmax.xlane.f32.xlu2 %v221_v22  ;;  %105 = vadd.xlane.f32.xlu0 %v104_v23  ;;  %39 = vst.msk [vmem:[#allocation2] sm:$0x3] %vm38_vm1, %v477_v21 }
  0x29   :  { %108 = vadd.xlane.f32.xlu1 %v107_v28 }
  0x2a   :  { %201 = vmax.xlane.f32.xlu2 %v200_v29  ;;  %84 = vadd.xlane.f32.xlu0 %v83_v30  ;;  %v307_v29 = vld [vmem:[%s695_s1 + $0x38] sm:$0xff]  ;;  %v306_v30 = vld [vmem:[%s695_s1 + $0x30] sm:$0xff] }
  0x2b   :  { %324 = vmatpush.msra.mxu0 %v307_v29 }
  0x2d   :  { %325 = vmatpush.msra.mxu0 %v306_v30 }
  0x2f   :  { %326 = vmatpush.msra.mxu0 %v305_v31 }
  0x31   :  { %87 = vadd.xlane.f32.xlu1 %v86_v35  ;;  %327 = vmatpush.msra.mxu0 %v304_v33 }
  0x32   :  { %111 = vadd.xlane.f32.xlu2 %v110_v36  ;;  %225 = vmax.xlane.f32.xlu0 %v224_v37  ;;  %v303_v36 = vld [vmem:[%s695_s1 + $0x18] sm:$0xff]  ;;  %v302_v37 = vld [vmem:[%s695_s1 + $0x10] sm:$0xff] }
  0x33   :  { %328 = vmatpush.msra.mxu0 %v303_v36 }
  0x35   :  { %329 = vmatpush.msra.mxu0 %v302_v37 }
  0x37   :  { %330 = vmatpush.msra.mxu0 %v301_v38 }
  0x39   :  { %228 = vmax.xlane.f32.xlu1 %v227_v40  ;;  %v587_v40 = vadd.s32 4294967272, %v512_v4 }
  0x3a   :  { %90 = vadd.xlane.f32.xlu2 %v89_v41  ;;  %204 = vmax.xlane.f32.xlu0 %v203_v42  ;;  %v300_v41 = vld [vmem:[%s695_s1] sm:$0xff] }
  0x3b   :  { %331 = vmatpush.msra.mxu0 %v300_v41 }
  0x41   :  { %207 = vmax.xlane.f32.xlu1 %v206_v45 }
  0x42   :  { %231 = vmax.xlane.f32.xlu2 %v230_v46  ;;  %114 = vadd.xlane.f32.xlu0 %v113_v47  ;;  %v600_v46 = vadd.s32 4294967256, %v512_v4 }
  0x49   :  { %117 = vadd.xlane.f32.xlu1 %v116_v52  ;;  %v611_v52 = vadd.s32 4294967248, %v512_v4 }
  0x4a   :  { %210 = vmax.xlane.f32.xlu2 %v209_v53  ;;  %93 = vadd.xlane.f32.xlu0 %v92_v54 }
  0x51   :  { %96 = vadd.xlane.f32.xlu1 %v95_v59 }
  0x52   :  { %120 = vadd.xlane.f32.xlu2 %v119_v60  ;;  %234 = vmax.xlane.f32.xlu0 %v233_v61 }
  0x59   :  { %237 = vmax.xlane.f32.xlu1 %v236_v62  ;;  %v165_v62 = vadd.s32 4294967240, %v512_v4 }
  0x5a   :  { %213 = vmax.xlane.f32.xlu0 %v212_v63 }
  0x7c   :  { %v508_v1 = vpop.xlane.xlu1 %99 }
  0x7d   :  { %v193_v2 = vpop.xlane.xlu2 %192  ;;  %v510_v3 = vpop.xlane.xlu0 %75  ;;  %v169_v49 = vperm.slane %v508_v1, %v512_v4 }
  0x7e   :  { %v255_v6 = vperm.slane %v193_v2, %v512_v4  ;;  %v140_v50 = vperm.slane %v510_v3, %v512_v4 }
  0x84   :  { %v518_v7 = vpop.xlane.xlu1 %102 }
  0x85   :  { %v196_v8 = vpop.xlane.xlu2 %195  ;;  %v520_v9 = vpop.xlane.xlu0 %78  ;;  %v170_v42 = vperm.slane %v518_v7, %v515_v5 }
  0x86   :  { %v256_v10 = vperm.slane %v196_v8, %v515_v5  ;;  %v142_v43 = vperm.slane %v520_v9, %v515_v5 }
  0x87   :  { %v171_v55 = vsel %vm143_vm0, %v170_v42, %v169_v49  ;;  %v190_v49 = vld [vmem:[#allocation3] sm:$0x3] }
  0x88   :  { %v524_v11 = vsel %vm143_vm0, %v256_v10, %v255_v6  ;;  %v144_v56 = vsel %vm143_vm0, %v142_v43, %v140_v50 }
  0x8c   :  { %v526_v12 = vpop.xlane.xlu1 %219 }
  0x8d   :  { %v528_v13 = vpop.xlane.xlu2 %81  ;;  %v530_v14 = vpop.xlane.xlu0 %216  ;;  %v271_v59 = vperm.slane %v526_v12, %v515_v5 }
  0x8e   :  { %v146_v51 = vperm.slane %v528_v13, %v584_v39  ;;  %v270_v6 = vperm.slane %v530_v14, %v512_v4 }
  0x90   :  { %v148_v63 = vsel %vm147_vm2, %v146_v51, %v144_v56  ;;  %v272_v33 = vsel %vm143_vm0, %v271_v59, %v270_v6  ;;  %v417_v59 = vld [vmem:[%s697_s3] ss:$0 sm:$0xff] }
  0x94   :  { %v532_v15 = vpop.xlane.xlu1 %198 }
  0x95   :  { %v534_v16 = vpop.xlane.xlu2 %222  ;;  %v536_v17 = vpop.xlane.xlu0 %105 }
  0x96   :  { %v172_v53 = vperm.slane %v536_v17, %v584_v39  ;;  %v273_v10 = vperm.slane %v534_v16, %v584_v39 }
  0x98   :  { %v173_v2 = vsel %vm147_vm2, %v172_v53, %v171_v55  ;;  %v274_v36 = vsel %vm147_vm2, %v273_v10, %v272_v33 }
  0x9c   :  { %v538_v18 = vpop.xlane.xlu1 %108 }
  0x9d   :  { %v540_v19 = vpop.xlane.xlu2 %201  ;;  %v542_v20 = vpop.xlane.xlu0 %84  ;;  %v174_v57 = vperm.slane %v538_v18, %v587_v40 }
  0x9e   :  { %v150_v54 = vperm.slane %v542_v20, %v587_v40  ;;  %v260_v29 = vperm.slane %v540_v19, %v587_v40 }
  0x9f   :  { %v175_v7 = vsel %vm151_vm3, %v174_v57, %v173_v2 }
  0xa0   :  { %v152_v3 = vsel %vm151_vm3, %v150_v54, %v148_v63 }
  0xa4   :  { %v545_v22 = vpop.xlane.xlu1 %87 }
  0xa5   :  { %v547_v23 = vpop.xlane.xlu2 %111  ;;  %v549_v24 = vpop.xlane.xlu0 %225  ;;  %v154_v58 = vperm.slane %v545_v22, %v597_v44  ;;  %v258_v22 = vperm.slane %v532_v15, %v584_v39 }
  0xa6   :  { %v176_v60 = vperm.slane %v547_v23, %v597_v44  ;;  %v275_v23 = vperm.slane %v549_v24, %v587_v40 }
  0xa7   :  { %v156_v8 = vsel %vm155_vm4, %v154_v58, %v152_v3  ;;  %v259_v38 = vsel %vm147_vm2, %v258_v22, %v524_v11  ;;  %v337_v58 = vld [vmem:[%s696_s2] sm:$0xf]  ;;  %s479_s2 = smov [#allocation7]  }
  0xa8   :  { %v177_v12 = vsel %vm155_vm4, %v176_v60, %v175_v7  ;;  %v276_v39 = vsel %vm151_vm3, %v275_v23, %v274_v36  ;;  %408 = vmatpush.msk.msra.mxu1 %vm342_vm11, %v337_v58  ;;  %s395_s3 = sshll.u32 %s479_s2, 4  ;;  %s396_s3 = int_to_ptr.vmem [resolvable:$true] %s395_s3 }
  0xac   :  { %v552_v26 = vpop.xlane.xlu1 %228 }
  0xad   :  { %v554_v27 = vpop.xlane.xlu2 %90  ;;  %v556_v28 = vpop.xlane.xlu0 %204  ;;  %v277_v30 = vperm.slane %v552_v26, %v597_v44 }
  0xae   :  { %v158_v61 = vperm.slane %v554_v27, %v600_v46  ;;  %v73_v27 = vld [vmem:[#allocation2] sm:$0x3]  ;;  %v262_v15 = vperm.slane %v556_v28, %v597_v44 }
  0xaf   :  { %v278_v40 = vsel %vm155_vm4, %v277_v30, %v276_v39 }
  0xb0   :  { %v160_v13 = vsel %vm159_vm5, %v158_v61, %v156_v8 }
  0xb4   :  { %v567_v32 = vpop.xlane.xlu1 %207 }
  0xb5   :  { %v572_v34 = vpop.xlane.xlu2 %231  ;;  %v115_v35 = vpop.xlane.xlu0 %114  ;;  %v264_v19 = vperm.slane %v567_v32, %v600_v46 }
  0xb6   :  { %v178_v0 = vperm.slane %v115_v35, %v600_v46  ;;  %v279_v24 = vperm.slane %v572_v34, %v600_v46  ;;  %v261_v34 = vsel %vm151_vm3, %v260_v29, %v259_v38 }
  0xb7   :  { %v263_v32 = vsel %vm155_vm4, %v262_v15, %v261_v34 }
  0xb8   :  { %v179_v21 = vsel %vm159_vm5, %v178_v0, %v177_v12  ;;  %v280_v42 = vsel %vm159_vm5, %v279_v24, %v278_v40  ;;  %v265_v11 = vsel %vm159_vm5, %v264_v19, %v263_v32 }
  0xbc   :  { %v118_v45 = vpop.xlane.xlu1 %117 }
  0xbd   :  { %v602_v47 = vpop.xlane.xlu2 %210  ;;  %v94_v48 = vpop.xlane.xlu0 %93  ;;  %v180_v5 = vperm.slane %v118_v45, %v611_v52 }
  0xbe   :  { %v162_v1 = vperm.slane %v94_v48, %v611_v52  ;;  %v266_v28 = vperm.slane %v602_v47, %v611_v52 }
  0xbf   :  { %v181_v16 = vsel %vm163_vm6, %v180_v5, %v179_v21 }
  0xc0   :  { %v164_v4 = vsel %vm163_vm6, %v162_v1, %v160_v13  ;;  %v267_v47 = vsel %vm163_vm6, %v266_v28, %v265_v11 }
  0xc4   :  { %v97_v9 = vpop.xlane.xlu1 %96 }
  0xc5   :  { %v166_v17 = vperm.slane %v97_v9, %v165_v62  ;;  %v121_v18 = vpop.xlane.xlu2 %120  ;;  %v235_v20 = vpop.xlane.xlu0 %234 }
  0xc6   :  { %v182_v14 = vperm.slane %v121_v18, %v165_v62  ;;  %v281_v26 = vperm.slane %v235_v20, %v611_v52 }
  0xc7   :  { %v168_v25 = vsel %vm167_vm7, %v166_v17, %v164_v4 }
  0xc8   :  { %v183_v31 = vsel %vm167_vm7, %v182_v14, %v181_v16  ;;  %v282_v45 = vsel %vm163_vm6, %v281_v26, %v280_v42 }
  0xc9   :  { %v185_v35 = vsel %vm184_vm8, %v183_v31, %v168_v25 }
  0xca   :  { %v187_v37 = vadd.f32 %v185_v35, %v73_v27 }
  0xcc   :  { %189 = vst.msk [vmem:[#allocation2] sm:$0x3] %vm38_vm1, %v187_v37  ;;  %v238_v41 = vpop.xlane.xlu1 %237 }
  0xcd   :  { %v283_v43 = vperm.slane %v238_v41, %v165_v62  ;;  %v214_v44 = vpop.xlane.xlu0 %213 }
  0xce   :  { %v268_v46 = vperm.slane %v214_v44, %v165_v62 }
  0xcf   :  { %v284_v48 = vsel %vm167_vm7, %v283_v43, %v282_v45 }
  0xd0   :  { %v269_v50 = vsel %vm167_vm7, %v268_v46, %v267_v47 }
  0xd1   :  { %v285_v51 = vsel %vm184_vm8, %v284_v48, %v269_v50 }
  0xd2   :  { %v287_v52 = vmax.f32 %v190_v49, %v285_v51 }
  0xd3   :  { %v292_v53 = vld [vmem:[#allocation2] sm:$0x3] }
  0xd4   :  { %288 = vst.msk [vmem:[#allocation3] sm:$0x3] %vm38_vm1, %v287_v52  ;;  %v293_v55 = vmul.f32 0.00390625, %v292_v53 }
  0xdb   :  { %v294_v54 = vld [vmem:[#allocation3] sm:$0x3] }
  0xdc   :  { %v296_v56 = vrot.slane %v294_v54, 6 }
  0xde   :  { %v299_v57 = vsel %vm298_vm9, %v293_v55, %v296_v56 }
  0xdf   :  { %407 = vmatmul.msk.f32.vlgmr.msra.gmra.mxu0 %vm312_vm10, %v299_v57 }
 0x15c   :  { %v333_v60 = vpop.f32.mrf.mxu0 }
 0x15d   :  { %v334_v61 = vadd.f32 %v417_v59, %v333_v60 }
 0x15f   :  { %v336_v62 = vmax.f32 %v334_v61, 0.0 }
 0x161   :  { %409 = vmatmul.msk.f32.vlgmr.msra.gmra.mxu1 %vm338_vm12, %v336_v62 }
 0x1de   :  { %v363_v63 = vpop.f32.mrf.mxu1 }
 0x1df   :  { %v367_v0 = vrot.slane %v363_v63, 2 }
 0x1e1   :  { %v369_v1 = vadd.f32 %v367_v0, %v363_v63 }
 0x1e3   :  { %v410_v2 = vmul.f32 -1.442695, %v369_v1 }
 0x1e5   :  { %418 = vpow2.f32 %v410_v2 }
 0x1eb   :  { %v419_v3 = vpop.eup %418 }
 0x1ec   :  { %v373_v5 = vadd.f32 1.0, %v419_v3 }
 0x1ee   :  { %420 = vrcp.f32 %v373_v5  ;;  %v385_v9 = vand.u32 2147483648, %v373_v5  ;;  %v383_v12 = vand.u32 2147483647, %v373_v5  ;;  %vm379_vm14 = vweird.f32 %v373_v5 }
 0x1f0   :  { %v386_v17 = vor.u32 1.1754944e-38, %v385_v9  ;;  %vm384_vm0 = vcmp.eq.f32.partialorder %v383_v12, 8.507059e+37 }
 0x1f4   :  { %v421_v6 = vpop.eup %420 }
 0x1f5   :  { %v375_v7 = vmul.f32 %v421_v6, %v373_v5  ;;  %vm380_vm13 = vweird.f32 %v421_v6 }
 0x1f6   :  { %vm381_vm15 = vmor %vm379_vm14, %vm380_vm13 }
 0x1f7   :  { %v376_v8 = vsub.f32 1.0, %v375_v7 }
 0x1f9   :  { %v377_v10 = vmul.f32 %v421_v6, %v376_v8 }
 0x1fb   :  { %v378_v13 = vadd.f32 %v421_v6, %v377_v10 }
 0x1fd   :  { %v382_v18 = vsel %vm381_vm15, %v421_v6, %v378_v13 }
 0x1fe   :  { %v387_v20 = vsel %vm384_vm0, %v386_v17, %v382_v18 }
 0x1ff   :  { %389 = vst.msk [vmem:[#allocation7] sm:$0x3] %vm38_vm1, %v387_v20 }
 0x200   :  { %400 = dma.vmem_to_hbm [thread:$0]  %s396_s3, 32, %s398_s16, [#allocation6]  }
 0x201   :  { %472 = dma.done.wait [#allocation6], 32  }
 0x202   :  { %473 = vsyncadd [#allocation6], 4294967264 }
 0x203   :  { %405 = vsyncpa [#allocation5], 1 }
 0x204   :  { %406 = vsyncpa [#allocation6], 1 }

</bundles_post_ra>
